<compile_context>
chip_gen: v7x
topology: tpu7x:2x2x1
jax: 0.10.0
libtpu: 0.0.40
codegen_flags: <defaults>
</compile_context>

<pallas_src>
import functools

import jax
import jax.numpy as jnp
from jax.experimental import pallas as pl
from jax.experimental.pallas import tpu as pltpu

_LANES = 128                       # vreg lane width
_SUBLANES = 8                      # vreg sublane count (f32)
_VMEM_LIMIT = 32 * 1024 * 1024     # explicit scoped-VMEM limit (<= v7x 64 MiB phys)
_VMEM_BUDGET = 22 * 1024 * 1024    # tile byte budget (~30% headroom under limit)
_MAX_CHUNKS_PER_TILE = 128         # <= 16384 rows per grid step


def _round_up(x: int, m: int) -> int:
    return ((x + m - 1) // m) * m


# --------------------------------------------------------------------------- #
# Kernels
# --------------------------------------------------------------------------- #
def _affine_pack1_kernel(x_ref, w_ref, b_ref, o_ref):
    """out_dim == 1 path.

    x_ref: (tile_b, d_in)  VMEM   tile_b = chunks * 128
    w_ref: (8, d_in)       VMEM   8 identical copies of W_eff^T
    b_ref: (1, 128)        VMEM   bias broadcast along lanes
    o_ref: (chunks, 128)   VMEM   lane-dense packed outputs: o[r, k] = y[128*r + k]
    """
    w = w_ref[...]
    b = b_ref[...]
    n_chunks = o_ref.shape[0]

    def body(r, carry):
        r0 = pl.multiple_of(r * _LANES, _LANES)
        x_chunk = x_ref[pl.ds(r0, _LANES), :]                     # (128, d_in)
        # Contract the feature axis of BOTH operands (q @ k.T pattern): the 128
        # examples of this chunk land on the lane axis of the MXU result, so
        # the store below is one unmasked lane-dense 128-wide row — no (.,1)
        # column output and no 128x write amplification.
        y = jax.lax.dot_general(
            w, x_chunk, (((1,), (1,)), ((), ())),
            preferred_element_type=jnp.float32)                   # (8, 128)
        o_ref[pl.ds(r, 1), :] = (y[0:1, :] + b).astype(o_ref.dtype)
        return carry

    jax.lax.fori_loop(0, n_chunks, body, 0)


def _affine_mxu_kernel(x_ref, w_ref, b_ref, o_ref):
    """General out_dim path: single MXU pass + fused bias add."""
    acc = jnp.dot(x_ref[...], w_ref[...], preferred_element_type=jnp.float32)
    o_ref[...] = (acc + b_ref[...]).astype(o_ref.dtype)


# --------------------------------------------------------------------------- #
# One-time parameter prep (collapse + kernel-friendly layouts)
# --------------------------------------------------------------------------- #
def collapse_params(params):
    w1, b1 = params["w1"], params["b1"]
    w2, b2 = params["w2"], params["b2"]
    w3, b3 = params["w3"], params["b3"]
    w4, b4 = params["w4"], params["b4"]
    w_eff = w1 @ w2 @ w3 @ w4                                   # (d_in, out_dim)
    b_eff = ((b1 @ w2 + b2) @ w3 + b3) @ w4 + b4                # (1, out_dim)
    return w_eff.astype(jnp.float32), b_eff.astype(jnp.float32)


def prepare_params(params):
    """Collapse the 4 layers and build kernel-ready layouts ONCE (hoisted out
    of the per-call forward)."""
    w_eff, b_eff = collapse_params(params)
    d_in, out_dim = w_eff.shape
    prepped = {"out_dim": int(out_dim)}
    if out_dim == 1:
        prepped["w_rep"] = jnp.tile(w_eff.reshape(1, d_in), (_SUBLANES, 1))   # (8, d_in)
        prepped["b_row"] = jnp.tile(b_eff.reshape(1, 1), (1, _LANES))         # (1, 128)
    else:
        out_pad = _round_up(out_dim, _LANES)
        prepped["w_pad"] = (jnp.zeros((d_in, out_pad), jnp.float32)
                            .at[:, :out_dim].set(w_eff))
        prepped["b_pad"] = (jnp.zeros((1, out_pad), jnp.float32)
                            .at[:, :out_dim].set(b_eff))
    return prepped


# --------------------------------------------------------------------------- #
# Forward wrappers
# --------------------------------------------------------------------------- #
@jax.jit
def _forward_out1(x, w_rep, b_row):
    """x: (B, d_in) f32; w_rep: (8, d_in); b_row: (1, 128)  ->  (B, 1)."""
    b_orig, d_in = x.shape

    # Tiny batches: pad once (negligible) so no block exceeds the array.
    if b_orig < _LANES:
        x = jnp.pad(x, ((0, _LANES - b_orig), (0, 0)))
    rows = x.shape[0]
    n_rows = pl.cdiv(rows, _LANES)          # 128-row chunks = packed output rows

    # Byte-budgeted tile size: double-buffered x chunk + packed output row.
    d_pad = _round_up(d_in, _LANES)         # VMEM lane padding of the x block
    per_chunk = 2 * 4 * (_LANES * d_pad + _LANES)
    max_chunks = _VMEM_BUDGET // per_chunk
    if max_chunks < 1 or (n_rows > max_chunks and max_chunks < _SUBLANES):
        # TODO(synk): K-tile the feature axis for very large input_dim; that
        # corner falls back to a plain XLA dot instead of the Pallas kernel.
        y = x @ w_rep[0:1, :].T + b_row[:, :1]
        return y[:b_orig]

    chunks = min(max_chunks, _MAX_CHUNKS_PER_TILE, n_rows)
    if chunks < n_rows:
        chunks = max((chunks // _SUBLANES) * _SUBLANES, _SUBLANES)
    else:
        # Everything fits in one tile: split into >= 2 grid steps (when legal)
        # so v7x's second TensorCore is not left idle.
        half = _round_up(pl.cdiv(n_rows, 2), _SUBLANES)
        if half < n_rows and half <= max_chunks:
            chunks = half
    n_tiles = pl.cdiv(n_rows, chunks)
    tile_b = chunks * _LANES

    cost = pl.CostEstimate(
        flops=2 * rows * d_in,              # real out_dim (=1), not padded width
        transcendentals=0,
        bytes_accessed=4 * (rows * d_in + _SUBLANES * d_in + _LANES
                            + n_rows * _LANES),
    )

    out_packed = pl.pallas_call(
        _affine_pack1_kernel,
        out_shape=jax.ShapeDtypeStruct((n_rows, _LANES), jnp.float32),
        grid_spec=pltpu.PrefetchScalarGridSpec(
            num_scalar_prefetch=0,
            grid=(n_tiles,),
            in_specs=[
                pl.BlockSpec((tile_b, d_in), lambda i: (i, 0)),      # x tile
                pl.BlockSpec((_SUBLANES, d_in), lambda i: (0, 0)),   # weights (VMEM-resident)
                pl.BlockSpec((1, _LANES), lambda i: (0, 0)),         # bias    (VMEM-resident)
            ],
            out_specs=pl.BlockSpec((chunks, _LANES), lambda i: (i, 0)),
        ),
        compiler_params=pltpu.CompilerParams(
            dimension_semantics=("parallel",),
            vmem_limit_bytes=_VMEM_LIMIT,
        ),
        cost_estimate=cost,
    )(x, w_rep, b_row)

    # Undo the lane packing; drop garbage tail rows / lanes from ragged blocks.
    return out_packed.reshape(-1)[:b_orig].reshape(b_orig, 1)


@functools.partial(jax.jit, static_argnames=("out_dim",))
def _forward_general(x, w_pad, b_pad, *, out_dim):
    """General out_dim > 1 path (not exercised by the demo spec)."""
    B, d_in = x.shape
    out_pad = w_pad.shape[1]
    d_pad = _round_up(d_in, _LANES)
    per_row = 2 * 4 * (d_pad + out_pad)                 # double-buffered x + out
    tile_b = min(_VMEM_BUDGET // per_row, 4096, _round_up(B, _SUBLANES))
    tile_b = (tile_b // _SUBLANES) * _SUBLANES
    if tile_b < _SUBLANES:
        # TODO(synk): K/N-tiling for very large input_dim / output_dim.
        return (x @ w_pad + b_pad)[:, :out_dim]
    n_tiles = pl.cdiv(B, tile_b)
    cost = pl.CostEstimate(
        flops=2 * B * d_in * out_dim,
        transcendentals=0,
        bytes_accessed=4 * (B * d_in + d_in * out_dim + out_dim + B * out_dim),
    )
    out = pl.pallas_call(
        _affine_mxu_kernel,
        out_shape=jax.ShapeDtypeStruct((B, out_pad), jnp.float32),
        grid_spec=pltpu.PrefetchScalarGridSpec(
            num_scalar_prefetch=0,
            grid=(n_tiles,),
            in_specs=[
                pl.BlockSpec((tile_b, d_in), lambda i: (i, 0)),
                pl.BlockSpec((d_in, out_pad), lambda i: (0, 0)),
                pl.BlockSpec((1, out_pad), lambda i: (0, 0)),
            ],
            out_specs=pl.BlockSpec((tile_b, out_pad), lambda i: (i, 0)),
        ),
        compiler_params=pltpu.CompilerParams(
            dimension_semantics=("parallel",),
            vmem_limit_bytes=_VMEM_LIMIT,
        ),
        cost_estimate=cost,
    )(x, w_pad, b_pad)
    return out[:, :out_dim]


def linear_regression_forward(x, prepped):
    if prepped["out_dim"] == 1:
        return _forward_out1(x, prepped["w_rep"], prepped["b_row"])
    return _forward_general(x, prepped["w_pad"], prepped["b_pad"],
                            out_dim=prepped["out_dim"])


# --------------------------------------------------------------------------- #
# Parameter init (matches nn.Linear defaults; weights stored as (in, out))
# --------------------------------------------------------------------------- #
def init_params(key, input_dim, hidden_dim, output_dim):
    def linear(k, fan_in, fan_out):
        kw, kb = jax.random.split(k)
        bound = 1.0 / jnp.sqrt(fan_in)
        w = jax.random.uniform(kw, (fan_in, fan_out), jnp.float32, -bound, bound)
        b = jax.random.uniform(kb, (1, fan_out), jnp.float32, -bound, bound)
        return w, b

    k1, k2, k3, k4 = jax.random.split(key, 4)
    w1, b1 = linear(k1, input_dim, hidden_dim)
    w2, b2 = linear(k2, hidden_dim, hidden_dim)
    w3, b3 = linear(k3, hidden_dim, hidden_dim)
    w4, b4 = linear(k4, hidden_dim, output_dim)
    return {"w1": w1, "b1": b1, "w2": w2, "b2": b2,
            "w3": w3, "b3": b3, "w4": w4, "b4": b4}


if __name__ == "__main__":
    key = jax.random.PRNGKey(0)
    kx, kp = jax.random.split(key)

    input_dim, hidden_dim, output_dim = 16, 32, 1
    params = init_params(kp, input_dim, hidden_dim, output_dim)
    prepped = prepare_params(params)        # one-time collapse + layout prep

    def reference(xb):
        r = xb
        for wi, bi in (("w1", "b1"), ("w2", "b2"), ("w3", "b3"), ("w4", "b4")):
            r = r @ params[wi] + params[bi]
        return r

    # Primary small case (module-spec shapes).
    batch = 8
    x = jax.random.normal(kx, (batch, input_dim), jnp.float32)
    out = jax.block_until_ready(linear_regression_forward(x, prepped))
    ref = reference(x)
    assert out.shape == (batch, output_dim), out.shape
    assert jnp.allclose(out, ref, atol=2e-5, rtol=2e-5), (
        float(jnp.max(jnp.abs(out - ref))))

    # Extra coverage: ragged last 128-row chunk (300) and a multi-tile grid
    # with a ragged last tile + ragged last chunk (4100).
    for batch in (300, 4100):
        xb = jax.random.normal(jax.random.fold_in(kx, batch),
                               (batch, input_dim), jnp.float32)
        ob = jax.block_until_ready(linear_regression_forward(xb, prepped))
        rb = reference(xb)
        assert ob.shape == (batch, output_dim), ob.shape
        assert jnp.allclose(ob, rb, atol=2e-5, rtol=2e-5), (
            float(jnp.max(jnp.abs(ob - rb))))

    print("KERNEL_OK")
</pallas_src>

<mosaic_0001>
module attributes {stable_mosaic.version = 11 : i64} {
  func.func @_affine_pack1_kernel(%arg0: i32, %arg1: memref<128x16xf32, #tpu.memory_space<vmem>>, %arg2: memref<8x16xf32, #tpu.memory_space<vmem>>, %arg3: memref<1x128xf32, #tpu.memory_space<vmem>>, %arg4: memref<1x128xf32, #tpu.memory_space<vmem>>) attributes {dimension_semantics = [#tpu.dimension_semantics<parallel>], iteration_bounds = array<i64: 1>, scalar_prefetch = 0 : i64, scratch_operands = 0 : i64, tpu.core_type = #tpu.core_type<tc>, window_params = [{transform_indices = @transform_0, window_bounds = array<i64: 128, 16>}, {pipeline_mode = #tpu.pipeline_mode<synchronous>, transform_indices = @transform_1, window_bounds = array<i64: 8, 16>}, {pipeline_mode = #tpu.pipeline_mode<synchronous>, transform_indices = @transform_2, window_bounds = array<i64: 1, 128>}, {transform_indices = @transform_3, window_bounds = array<i64: 1, 128>}]} {
    %c0 = arith.constant 0 : index
    %c0_0 = arith.constant 0 : index
    %0 = vector.load %arg2[%c0, %c0_0] : memref<8x16xf32, #tpu.memory_space<vmem>>, vector<8x16xf32>
    %c0_1 = arith.constant 0 : index
    %c0_2 = arith.constant 0 : index
    %1 = vector.load %arg3[%c0_1, %c0_2] : memref<1x128xf32, #tpu.memory_space<vmem>>, vector<1x128xf32>
    %c0_i32 = arith.constant 0 : i32
    %c128_i32 = arith.constant 128 : i32
    %2 = arith.muli %c0_i32, %c128_i32 : i32
    %3 = tpu.assume_multiple %2, 128 : i32
    %4 = arith.index_cast %3 : i32 to index
    %c0_3 = arith.constant 0 : index
    %5 = vector.load %arg1[%4, %c0_3] : memref<128x16xf32, #tpu.memory_space<vmem>>, vector<128x16xf32>
    %cst = arith.constant dense<0.000000e+00> : vector<8x128xf32>
    %6 = tpu.matmul %0, %5, %cst {dimension_numbers = #tpu.dot_dimension_numbers<[1], [1], [0], [0], [0, 0, 1, 0], [], []>} : vector<8x16xf32>, vector<128x16xf32>, vector<8x128xf32> -> vector<8x128xf32>
    %7 = vector.extract_strided_slice %6 {offsets = [0, 0], sizes = [1, 128], strides = [1, 1]} : vector<8x128xf32> to vector<1x128xf32>
    %8 = arith.addf %7, %1 : vector<1x128xf32>
    %9 = arith.index_cast %c0_i32 : i32 to index
    %c0_4 = arith.constant 0 : index
    %10 = vector.load %arg4[%9, %c0_4] : memref<1x128xf32, #tpu.memory_space<vmem>>, vector<1x128xf32>
    tpu.vector_store %arg4[%9, %c0_4], %8 {strides = array<i32>} : memref<1x128xf32, #tpu.memory_space<vmem>>, vector<1x128xf32>,
    %c1_i32 = arith.constant 1 : i32
    return
  }
  func.func @transform_0(%arg0: i32) -> (i32, i32) {
    %c0_i32 = arith.constant 0 : i32
    %c0_i32_0 = arith.constant 0 : i32
    return %arg0, %c0_i32 : i32, i32
  }
  func.func @transform_1(%arg0: i32) -> (i32, i32) {
    %c0_i32 = arith.constant 0 : i32
    %c0_i32_0 = arith.constant 0 : i32
    %c0_i32_1 = arith.constant 0 : i32
    return %c0_i32, %c0_i32_0 : i32, i32
  }
  func.func @transform_2(%arg0: i32) -> (i32, i32) {
    %c0_i32 = arith.constant 0 : i32
    %c0_i32_0 = arith.constant 0 : i32
    %c0_i32_1 = arith.constant 0 : i32
    return %c0_i32, %c0_i32_0 : i32, i32
  }
  func.func @transform_3(%arg0: i32) -> (i32, i32) {
    %c0_i32 = arith.constant 0 : i32
    %c0_i32_0 = arith.constant 0 : i32
    return %arg0, %c0_i32 : i32, i32
  }
}

</mosaic_0001>

<bundles_post_ra>
// kernel: _forward_out1.1
= control target key start
LH: loop header
LB: loop body
LE: loop exit
PB: predicated region body
PF: predicated region fallthrough
CT: control target
= control target key end

     0   :  { %vm32_vm0 = vcmask 130048   ;;  %v264_v0 = vmov 0.0|0.0   ;;  %vm265_vm2 = vmmov 0   ;;  %v266_v4 = vmov 0.0   ;;  %s367_s0 = inlined_call_operand.vmem [shape: f32[128,16], index: 0, kind: input, shape index: {}]   ;;  %s368_s1 = inlined_call_operand.vmem [shape: f32[8,16], index: 1, kind: input, shape index: {}]   ;;  %s369_s2 = inlined_call_operand.vmem [shape: f32[1,128], index: 2, kind: input, shape index: {}]   ;;  %s370_s3 = inlined_call_operand.vmem [shape: f32[1,128], index: 3, kind: output, shape index: {}]  }
   0x1   :  { %229 = vmatprep.subr.bf16.mxu0 %v264_v0  ;;  %v16_v1 = vld [vmem:[%s367_s0] sm:$0xff]  ;;  %v17_v2 = vld [vmem:[%s367_s0 + $0x8] sm:$0xff]  ;;  %vm295_vm1 = vmpackc.low %vm32_vm0, %vm32_vm0  ;;  %226 = vmatprep.mubr.msk.f32.mxu0 %vm265_vm2, %v266_v4 }
   0x2   :  { %v230_v5 = vpack.c.bf16 %v17_v2, %v16_v1  ;;  %v18_v6 = vld [vmem:[%s367_s0 + $0x10] sm:$0xff]  ;;  %v19_v7 = vld [vmem:[%s367_s0 + $0x18] sm:$0xff]  ;;  %v20_v9 = vld [vmem:[%s367_s0 + $0x20] sm:$0xff] }
   0x3   :  { %v234_v8 = vpack.c.bf16 %v19_v7, %v18_v6  ;;  %v21_v10 = vld [vmem:[%s367_s0 + $0x28] sm:$0xff]  ;;  %v22_v12 = vld [vmem:[%s367_s0 + $0x30] sm:$0xff]  ;;  %v23_v13 = vld [vmem:[%s367_s0 + $0x38] sm:$0xff] }
   0x4   :  { %232 = vmatpush3.bf16.xpose.msk.msra.mxu0 %vm295_vm1, %v230_v5  ;;  %v238_v11 = vpack.c.bf16 %v21_v10, %v20_v9  ;;  %v242_v14 = vpack.c.bf16 %v23_v13, %v22_v12  ;;  %v24_v15 = vld [vmem:[%s367_s0 + $0x40] sm:$0xff]  ;;  %v25_v16 = vld [vmem:[%s367_s0 + $0x48] sm:$0xff]  ;;  %v26_v18 = vld [vmem:[%s367_s0 + $0x50] sm:$0xff] }
   0x5   :  { %233 = vmatprep.subr.bf16.mxu0 %v264_v0  ;;  %v246_v17 = vpack.c.bf16 %v25_v16, %v24_v15  ;;  %v27_v19 = vld [vmem:[%s367_s0 + $0x58] sm:$0xff]  ;;  %v28_v21 = vld [vmem:[%s367_s0 + $0x60] sm:$0xff]  ;;  %v29_v22 = vld [vmem:[%s367_s0 + $0x68] sm:$0xff] }
   0x6   :  { %v250_v20 = vpack.c.bf16 %v27_v19, %v26_v18  ;;  %v254_v23 = vpack.c.bf16 %v29_v22, %v28_v21  ;;  %v30_v24 = vld [vmem:[%s367_s0 + $0x70] sm:$0xff]  ;;  %v31_v25 = vld [vmem:[%s367_s0 + $0x78] sm:$0xff]  ;;  %v14_v27 = vld [vmem:[%s368_s1] sm:$0xff] }
   0x7   :  { %v258_v26 = vpack.c.bf16 %v31_v25, %v30_v24  ;;  %v15_v28 = vld [vmem:[%s369_s2] sm:$0x1] }
   0xc   :  { %236 = vmatpush3.bf16.xpose.msk.msra.mxu0 %vm295_vm1, %v234_v8 }
   0xd   :  { %237 = vmatprep.subr.bf16.mxu0 %v264_v0 }
  0x14   :  { %240 = vmatpush3.bf16.xpose.msk.msra.mxu0 %vm295_vm1, %v238_v11 }
  0x15   :  { %241 = vmatprep.subr.bf16.mxu0 %v264_v0 }
  0x1c   :  { %244 = vmatpush3.bf16.xpose.msk.msra.mxu0 %vm295_vm1, %v242_v14 }
  0x1d   :  { %245 = vmatprep.subr.bf16.mxu0 %v264_v0 }
  0x24   :  { %248 = vmatpush3.bf16.xpose.msk.msra.mxu0 %vm295_vm1, %v246_v17 }
  0x25   :  { %249 = vmatprep.subr.bf16.mxu0 %v264_v0 }
  0x2c   :  { %252 = vmatpush3.bf16.xpose.msk.msra.mxu0 %vm295_vm1, %v250_v20 }
  0x2d   :  { %253 = vmatprep.subr.bf16.mxu0 %v264_v0 }
  0x34   :  { %256 = vmatpush3.bf16.xpose.msk.msra.mxu0 %vm295_vm1, %v254_v23 }
  0x35   :  { %257 = vmatprep.subr.bf16.mxu0 %v264_v0 }
  0x3c   :  { %260 = vmatpush3.bf16.xpose.msk.msra.mxu0 %vm295_vm1, %v258_v26 }
  0x43   :  { %227 = vmatmul.mubr.msk.f32.vlgmr.msra.gmra.mrb[0].mxu0 %vm32_vm0, %v14_v27 }
 0x116   :  { %v150_v29 = vpop.f32.mrb[0].mxu0 }
 0x117   :  { %v154_v30 = vadd.f32 %v150_v29, %v15_v28  ;;  %v228_v31 = vpop.f32.mrb[1].mxu0 }
 0x119   :  { %155 = vst [vmem:[%s370_s3] sm:$0x1] %v154_v30 }

</bundles_post_ra>
